<compile_context>
chip_gen: v5e
topology: v5e:2x2
jax: 0.10.0
libtpu: 0.0.40
codegen_flags: <defaults>
</compile_context>

<pallas_src>
import functools

import jax
import jax.numpy as jnp
import numpy as np
from jax.experimental import pallas as pl
from jax.experimental.pallas import tpu as pltpu  # noqa: F401  (no scratch needed anymore)

LANE = 128  # f32 lane tile


def _round_up(x, m):
    return (x + m - 1) // m * m


# ---------------------------------------------------------------------------
# Fused kernel: whole DenseNet-FC backbone + merged heads, single launch,
# all feature state in vector registers.
# ---------------------------------------------------------------------------
def _converter_servo_kernel(x_ref, wx_ref, wy_ref, b_ref, o_ref, *, growth, n_layers):
    B = x_ref.shape[0]
    ncols = o_ref.shape[-1]  # padded column count (dense outputs | heads | zeros)

    # Raw-input (+ bias) contribution to every dense-layer output and every head column.
    # One small MXU pass, f32 accumulate, reused by all layers.
    base = jnp.dot(x_ref[...].astype(jnp.bfloat16), wx_ref[...],
                   preferred_element_type=jnp.float32) + b_ref[...]

    wy = wy_ref[...]                                             # (ncols, ncols) bf16
    col = jax.lax.broadcasted_iota(jnp.int32, (B, ncols), 1)
    yslab = jnp.zeros((B, ncols), jnp.float32)                   # generated features, in regs

    full = base                                                  # layer-0 pre-activations
    for l in range(n_layers):                                    # tiny, statically unrolled
        off = l * growth
        mask = (col >= off) & (col < off + growth)
        # "dense concat": drop layer l's ReLU output into its `growth` columns of yslab.
        yslab = jnp.where(mask, jnp.maximum(full, 0.0), yslab)
        # Pre-activations of layer l+1 (and, after the last layer, the head outputs).
        full = base + jnp.dot(yslab.astype(jnp.bfloat16), wy,
                              preferred_element_type=jnp.float32)

    # Head outputs live in columns [n_layers*growth, n_layers*growth + sum(widths));
    # the single store is 128-lane dense and unmasked along lanes.
    o_ref[...] = full


# ---------------------------------------------------------------------------
# Parameter construction (deterministic, PyTorch nn.Linear-style uniform init).
# ---------------------------------------------------------------------------
def _init_linear(key, c_in, c_out, dtype=jnp.float32):
    kw, kb = jax.random.split(key)
    bound = 1.0 / np.sqrt(float(c_in))
    w = jax.random.uniform(kw, (c_in, c_out), dtype, minval=-bound, maxval=bound)
    b = jax.random.uniform(kb, (c_out,), dtype, minval=-bound, maxval=bound)
    return w, b


def make_converter_servo_params(key, num_input, growth_rate, block_cfg, num_outputs):
    """Natural (unpadded) parameters; weights stored as (in_features, out_features)."""
    n_layers = int(sum(block_cfg))
    keys = jax.random.split(key, n_layers + len(num_outputs))

    dense_layers = []
    c_in = num_input
    for i in range(n_layers):
        dense_layers.append(_init_linear(keys[i], c_in, growth_rate))
        c_in += growth_rate
    c_output = c_in

    heads = [_init_linear(keys[n_layers + j], c_output, out)
             for j, out in enumerate(num_outputs)]

    return {
        "dense_layers": dense_layers,
        "heads": heads,
        "c_output": c_output,
        "num_input": num_input,
        "growth_rate": growth_rate,
        "num_outputs": tuple(int(o) for o in num_outputs),
    }


def pack_converter_servo_params(params):
    """Pack every layer & head into two bf16 matrices + one f32 bias row.

    Column layout (shared by W_x, W_y, bias, and the kernel output):
      [ layer0 (growth) | layer1 | ... | layer{L-1} | head0 | head1 | ... | zero pad ] -> 128
    Row layout:
      W_x rows  = the raw-input features (num_input rows).
      W_y rows  = the generated features y_0..y_{L-1} (row block j holds y_j's rows);
                  rows >= j*growth are zero for layer j's columns (packing invariant).
    """
    num_input = params["num_input"]
    growth = params["growth_rate"]
    n_layers = len(params["dense_layers"])
    widths = params["num_outputs"]

    y_total = n_layers * growth           # number of generated features
    head_off = y_total                    # head columns start right after the dense columns
    ncols = _round_up(head_off + sum(widths), LANE)

    w_x = np.zeros((num_input, ncols), np.float32)
    w_y = np.zeros((ncols, ncols), np.float32)   # square so yslab needs no slicing
    bias = np.zeros((1, ncols), np.float32)

    for l, (w, b) in enumerate(params["dense_layers"]):
        w = np.asarray(w, np.float32)
        b = np.asarray(b, np.float32)
        c0, c1 = l * growth, (l + 1) * growth
        w_x[:, c0:c1] = w[:num_input, :]               # raw-input rows
        w_y[: l * growth, c0:c1] = w[num_input:, :]    # already-generated feature rows
        bias[0, c0:c1] = b

    col = head_off
    for (w, b), width in zip(params["heads"], widths):
        w = np.asarray(w, np.float32)
        b = np.asarray(b, np.float32)
        w_x[:, col:col + width] = w[:num_input, :]
        w_y[:y_total, col:col + width] = w[num_input:, :]
        bias[0, col:col + width] = b
        col += width

    meta = dict(growth=growth, n_layers=n_layers, widths=widths,
                num_input=num_input, head_off=head_off, ncols=ncols)
    return (jnp.asarray(w_x, jnp.bfloat16),
            jnp.asarray(w_y, jnp.bfloat16),
            jnp.asarray(bias, jnp.float32),
            meta)


# ---------------------------------------------------------------------------
# Forward pass: one gridless pallas_call, then split the heads out of the 128 columns.
# ---------------------------------------------------------------------------
def make_converter_servo_forward(meta):
    growth = meta["growth"]
    n_layers = meta["n_layers"]
    widths = meta["widths"]
    head_off = meta["head_off"]
    ncols = meta["ncols"]

    kernel = functools.partial(_converter_servo_kernel, growth=growth, n_layers=n_layers)

    def forward(w_x, w_y, bias, x):
        B = x.shape[0]
        out = pl.pallas_call(
            kernel,
            out_shape=jax.ShapeDtypeStruct((B, ncols), jnp.float32),
            # No grid, no BlockSpecs: every operand is a full-array block, VMEM-resident
            # for the whole (tiny) kernel; no pipeline prologue/epilogue overhead.
        )(x.astype(jnp.float32), w_x, w_y, bias)

        outs = []
        col = head_off
        for width in widths:
            outs.append(jnp.squeeze(out[:, col:col + width]))
            col += width
        return outs

    return jax.jit(forward)


# ---------------------------------------------------------------------------
# Pure-JAX reference (correctness check only).
# ---------------------------------------------------------------------------
def _reference_forward(params, x):
    feats = x
    for w, b in params["dense_layers"]:
        y = jnp.maximum(feats @ w + b, 0.0)
        feats = jnp.concatenate([feats, y], axis=1)
    return [jnp.squeeze(feats @ w + b) for w, b in params["heads"]]


if __name__ == "__main__":
    # Small, module-consistent configuration.
    num_input = 32
    growth_rate = 16
    block_cfg = (2, 2)          # 4 dense FC layers total
    num_outputs = (8, 4, 1)     # three heads; the size-1 head exercises .squeeze()
    batch = 4

    key = jax.random.PRNGKey(0)
    kparams, kx = jax.random.split(key)

    params = make_converter_servo_params(
        kparams, num_input, growth_rate, block_cfg, num_outputs
    )
    w_x, w_y, bias, meta = pack_converter_servo_params(params)
    forward = make_converter_servo_forward(meta)

    x = jax.random.normal(kx, (batch, num_input), dtype=jnp.float32)

    outs = forward(w_x, w_y, bias, x)
    outs = [jax.block_until_ready(o) for o in outs]

    # Shapes follow the PyTorch module (with squeeze on the size-1 head).
    assert outs[0].shape == (batch, 8)
    assert outs[1].shape == (batch, 4)
    assert outs[2].shape == (batch,)

    # Numerical sanity vs. a pure-JAX reference.
    refs = _reference_forward(params, x)
    for o, r in zip(outs, refs):
        np.testing.assert_allclose(np.asarray(o), np.asarray(r), rtol=2e-2, atol=2e-2)

    print("KERNEL_OK")
</pallas_src>

<mosaic_0001>
module attributes {stable_mosaic.version = 11 : i64} {
  func.func @_converter_servo_kernel(%arg0: memref<4x32xf32, #tpu.memory_space<vmem>>, %arg1: memref<32x128xbf16, #tpu.memory_space<vmem>>, %arg2: memref<128x128xbf16, #tpu.memory_space<vmem>>, %arg3: memref<1x128xf32, #tpu.memory_space<vmem>>, %arg4: memref<4x128xf32, #tpu.memory_space<vmem>>) attributes {dimension_semantics = [], scalar_prefetch = 0 : i64, scratch_operands = 0 : i64, tpu.core_type = #tpu.core_type<tc>} {
    %c0 = arith.constant 0 : index
    %c0_0 = arith.constant 0 : index
    %0 = vector.load %arg0[%c0, %c0_0] : memref<4x32xf32, #tpu.memory_space<vmem>>, vector<4x32xf32>
    %1 = arith.truncf %0 : vector<4x32xf32> to vector<4x32xbf16>
    %c0_1 = arith.constant 0 : index
    %c0_2 = arith.constant 0 : index
    %2 = vector.load %arg1[%c0_1, %c0_2] : memref<32x128xbf16, #tpu.memory_space<vmem>>, vector<32x128xbf16>
    %cst = arith.constant dense<0.000000e+00> : vector<4x128xf32>
    %3 = tpu.matmul %1, %2, %cst {dimension_numbers = #tpu.dot_dimension_numbers<[1], [0], [0], [1], [0, 0, 1, 1], [], []>} : vector<4x32xbf16>, vector<32x128xbf16>, vector<4x128xf32> -> vector<4x128xf32>
    %c0_3 = arith.constant 0 : index
    %c0_4 = arith.constant 0 : index
    %4 = vector.load %arg3[%c0_3, %c0_4] : memref<1x128xf32, #tpu.memory_space<vmem>>, vector<1x128xf32>
    %5 = vector.broadcast %4 : vector<1x128xf32> to vector<4x128xf32>
    %6 = arith.addf %3, %5 : vector<4x128xf32>
    %c0_5 = arith.constant 0 : index
    %c0_6 = arith.constant 0 : index
    %7 = vector.load %arg2[%c0_5, %c0_6] : memref<128x128xbf16, #tpu.memory_space<vmem>>, vector<128x128xbf16>
    %8 = tpu.iota {dimensions = array<i32: 1>} : vector<4x128xi32>
    %cst_7 = arith.constant 0.000000e+00 : f32
    %9 = vector.broadcast %cst_7 : f32 to vector<4x128xf32>
    %c0_i32 = arith.constant 0 : i32
    %10 = vector.broadcast %c0_i32 : i32 to vector<4x128xi32>
    %11 = arith.cmpi sge, %8, %10 : vector<4x128xi32>
    %c16_i32 = arith.constant 16 : i32
    %12 = vector.broadcast %c16_i32 : i32 to vector<4x128xi32>
    %13 = arith.cmpi slt, %8, %12 : vector<4x128xi32>
    %14 = arith.andi %11, %13 : vector<4x128xi1>
    %cst_8 = arith.constant 0.000000e+00 : f32
    %15 = vector.broadcast %cst_8 : f32 to vector<4x128xf32>
    %16 = arith.maximumf %6, %15 : vector<4x128xf32>
    %17 = arith.select %14, %16, %9 : vector<4x128xi1>, vector<4x128xf32>
    %18 = arith.truncf %17 : vector<4x128xf32> to vector<4x128xbf16>
    %cst_9 = arith.constant dense<0.000000e+00> : vector<4x128xf32>
    %19 = tpu.matmul %18, %7, %cst_9 {dimension_numbers = #tpu.dot_dimension_numbers<[1], [0], [0], [1], [0, 0, 1, 1], [], []>} : vector<4x128xbf16>, vector<128x128xbf16>, vector<4x128xf32> -> vector<4x128xf32>
    %20 = arith.addf %6, %19 : vector<4x128xf32>
    %c16_i32_10 = arith.constant 16 : i32
    %21 = vector.broadcast %c16_i32_10 : i32 to vector<4x128xi32>
    %22 = arith.cmpi sge, %8, %21 : vector<4x128xi32>
    %c32_i32 = arith.constant 32 : i32
    %23 = vector.broadcast %c32_i32 : i32 to vector<4x128xi32>
    %24 = arith.cmpi slt, %8, %23 : vector<4x128xi32>
    %25 = arith.andi %22, %24 : vector<4x128xi1>
    %cst_11 = arith.constant 0.000000e+00 : f32
    %26 = vector.broadcast %cst_11 : f32 to vector<4x128xf32>
    %27 = arith.maximumf %20, %26 : vector<4x128xf32>
    %28 = arith.select %25, %27, %17 : vector<4x128xi1>, vector<4x128xf32>
    %29 = arith.truncf %28 : vector<4x128xf32> to vector<4x128xbf16>
    %cst_12 = arith.constant dense<0.000000e+00> : vector<4x128xf32>
    %30 = tpu.matmul %29, %7, %cst_12 {dimension_numbers = #tpu.dot_dimension_numbers<[1], [0], [0], [1], [0, 0, 1, 1], [], []>} : vector<4x128xbf16>, vector<128x128xbf16>, vector<4x128xf32> -> vector<4x128xf32>
    %31 = arith.addf %6, %30 : vector<4x128xf32>
    %c32_i32_13 = arith.constant 32 : i32
    %32 = vector.broadcast %c32_i32_13 : i32 to vector<4x128xi32>
    %33 = arith.cmpi sge, %8, %32 : vector<4x128xi32>
    %c48_i32 = arith.constant 48 : i32
    %34 = vector.broadcast %c48_i32 : i32 to vector<4x128xi32>
    %35 = arith.cmpi slt, %8, %34 : vector<4x128xi32>
    %36 = arith.andi %33, %35 : vector<4x128xi1>
    %cst_14 = arith.constant 0.000000e+00 : f32
    %37 = vector.broadcast %cst_14 : f32 to vector<4x128xf32>
    %38 = arith.maximumf %31, %37 : vector<4x128xf32>
    %39 = arith.select %36, %38, %28 : vector<4x128xi1>, vector<4x128xf32>
    %40 = arith.truncf %39 : vector<4x128xf32> to vector<4x128xbf16>
    %cst_15 = arith.constant dense<0.000000e+00> : vector<4x128xf32>
    %41 = tpu.matmul %40, %7, %cst_15 {dimension_numbers = #tpu.dot_dimension_numbers<[1], [0], [0], [1], [0, 0, 1, 1], [], []>} : vector<4x128xbf16>, vector<128x128xbf16>, vector<4x128xf32> -> vector<4x128xf32>
    %42 = arith.addf %6, %41 : vector<4x128xf32>
    %c48_i32_16 = arith.constant 48 : i32
    %43 = vector.broadcast %c48_i32_16 : i32 to vector<4x128xi32>
    %44 = arith.cmpi sge, %8, %43 : vector<4x128xi32>
    %c64_i32 = arith.constant 64 : i32
    %45 = vector.broadcast %c64_i32 : i32 to vector<4x128xi32>
    %46 = arith.cmpi slt, %8, %45 : vector<4x128xi32>
    %47 = arith.andi %44, %46 : vector<4x128xi1>
    %cst_17 = arith.constant 0.000000e+00 : f32
    %48 = vector.broadcast %cst_17 : f32 to vector<4x128xf32>
    %49 = arith.maximumf %42, %48 : vector<4x128xf32>
    %50 = arith.select %47, %49, %39 : vector<4x128xi1>, vector<4x128xf32>
    %51 = arith.truncf %50 : vector<4x128xf32> to vector<4x128xbf16>
    %cst_18 = arith.constant dense<0.000000e+00> : vector<4x128xf32>
    %52 = tpu.matmul %51, %7, %cst_18 {dimension_numbers = #tpu.dot_dimension_numbers<[1], [0], [0], [1], [0, 0, 1, 1], [], []>} : vector<4x128xbf16>, vector<128x128xbf16>, vector<4x128xf32> -> vector<4x128xf32>
    %53 = arith.addf %6, %52 : vector<4x128xf32>
    %c0_19 = arith.constant 0 : index
    %c0_20 = arith.constant 0 : index
    %54 = vector.load %arg4[%c0_19, %c0_20] : memref<4x128xf32, #tpu.memory_space<vmem>>, vector<4x128xf32>
    tpu.vector_store %arg4[%c0_19, %c0_20], %53 {strides = array<i32>} : memref<4x128xf32, #tpu.memory_space<vmem>>, vector<4x128xf32>,
    return
  }
}

</mosaic_0001>

<bundles_post_ra>
// kernel: forward.1
= control target key start
LH: loop header
LB: loop body
LE: loop exit
PB: predicated region body
PF: predicated region fallthrough
CT: control target
= control target key end

     0   :  { %9 = vsyncpa [#allocation3], 0  ;;  %s436_s0 = inlined_call_operand.hbm [shape: f32[4,32], index: 0, kind: input, shape index: {}]   ;;  %s437_s1 = inlined_call_operand.hbm [shape: bf16[32,128], index: 1, kind: input, shape index: {}]   ;;  %s438_s2 = inlined_call_operand.hbm [shape: bf16[128,128], index: 2, kind: input, shape index: {}]   ;;  %s439_s3 = inlined_call_operand.vmem [shape: f32[1,128], index: 3, kind: input, shape index: {}]   ;;  %s440_s4 = inlined_call_operand.vmem [shape: f32[4,128], index: 4, kind: output, shape index: {}]  }
   0x1   :  { %10 = vsyncpa [#allocation5], 0  ;;  %s26_s17 = sshll.u32 %s437_s1, 4  ;;  %s391_s18 = smov [#allocation4]   ;;  %s27_s17 = int_to_ptr.hbm [resolvable:$true] %s26_s17 }
   0x2   :  { %s28_s19 = sshll.u32 %s391_s18, 4  ;;  %s16_s22 = sshll.u32 %s436_s0, 4  ;;  %s29_s19 = int_to_ptr.vmem [resolvable:$true] %s28_s19  ;;  %s17_s22 = int_to_ptr.hbm [resolvable:$true] %s16_s22 }
   0x3   :  { %s392_s23 = smov 64   ;;  %s393_s24 = smov 4  }
   0x4   :  { %34 = dma.hbm_to_vmem [thread:$0]  %s27_s17, 256, %s29_s19, [#allocation5], %s392_s23, %s392_s23, %s393_s24  }
   0x5   :  { %s394_s25 = smov [#allocation2]   ;;  %s39_s29 = sshll.u32 %s438_s2, 4  ;;  %s40_s29 = int_to_ptr.hbm [resolvable:$true] %s39_s29 }
   0x6   :  { %s18_s26 = sshll.u32 %s394_s25, 4  ;;  %s395_s1 = smov [#allocation6]   ;;  %s19_s26 = int_to_ptr.vmem [resolvable:$true] %s18_s26 }
   0x7   :  { %21 = dma.hbm_to_vmem [thread:$0]  %s17_s22, 64, %s19_s26, [#allocation3]  }
   0x8   :  { %s41_s30 = sshll.u32 %s395_s1, 4  ;;  %s42_s30 = int_to_ptr.vmem [resolvable:$true] %s41_s30 }
   0x9   :  { %47 = dma.hbm_to_vmem [thread:$0]  %s40_s29, 1024, %s42_s30, [#allocation5], %s392_s23, %s392_s23, %s393_s24  }
   0xa   :  { %387 = dma.done.wait [#allocation3], 64  }
   0xb   :  { %388 = vsyncadd [#allocation3], 4294967232 }
   0xc   :  { %389 = dma.done.wait [#allocation5], 1280  }
   0xd   :  { %390 = vsyncadd [#allocation5], 4294966016  ;;  %v300_v0 = vld [vmem:[#allocation4 + $0x8] sm:$0xff]  ;;  %v299_v2 = vld [vmem:[#allocation4] sm:$0xff]  ;;  %vm85_vm0 = vcmask 261120   ;;  %v118_v12 = vlaneseq }
   0xe   :  { %v308_v1 = vld [vmem:[#allocation6 + $0x38] sm:$0xff]  ;;  %95 = vmatpush.bf16.msra.mxu0 %v300_v0  ;;  %v63_v3 = vld [vmem:[#allocation2] sm:$0xf]  ;;  %v307_v4 = vld [vmem:[#allocation6 + $0x30] sm:$0xff] }
   0xf   :  { %174 = vmatpush.bf16.msra.mxu1 %v308_v1  ;;  %194 = vmatpush.bf16.msra.mxu2 %v308_v1  ;;  %v64_v5 = vpack.c.bf16 %v63_v3, %v63_v3  ;;  %v306_v6 = vld [vmem:[#allocation6 + $0x28] sm:$0xff]  ;;  %v305_v7 = vld [vmem:[#allocation6 + $0x20] sm:$0xff]  ;;  %v304_v8 = vld [vmem:[#allocation6 + $0x18] sm:$0xff]  ;;  %v119_v14 = vand.u32 127, %v118_v12 }
  0x10   :  { %214 = vmatpush.bf16.msra.mxu3 %v308_v1  ;;  %v303_v9 = vld [vmem:[#allocation6 + $0x10] sm:$0xff]  ;;  %v302_v10 = vld [vmem:[#allocation6 + $0x8] sm:$0xff]  ;;  %v301_v11 = vld [vmem:[#allocation6] sm:$0xff] }
  0x11   :  { %v314_v13 = vld [vmem:[%s439_s3] ss:$0 sm:$0xff]  ;;  %vm121_vm1 = vcmp.lt.s32.totalorder %v119_v14, 16  ;;  %vm188_vm3 = vcmp.ge.s32.totalorder %v119_v14, 16  ;;  %vm189_vm4 = vcmp.lt.s32.totalorder %v119_v14, 32  ;;  %vm208_vm6 = vcmp.ge.s32.totalorder %v119_v14, 32 }
  0x12   :  { %96 = vmatpush.bf16.msra.mxu0 %v299_v2  ;;  %vm296_vm2 = vmpackc.low %vm121_vm1, %vm121_vm1  ;;  %vm209_vm7 = vcmp.lt.s32.totalorder %v119_v14, 48  ;;  %vm228_vm9 = vcmp.ge.s32.totalorder %v119_v14, 48  ;;  %vm229_vm10 = vcmp.lt.s32.totalorder %v119_v14, 64 }
  0x13   :  { %175 = vmatpush.bf16.msra.mxu1 %v307_v4  ;;  %195 = vmatpush.bf16.msra.mxu2 %v307_v4  ;;  %vm190_vm5 = vmand %vm188_vm3, %vm189_vm4 }
  0x14   :  { %215 = vmatpush.bf16.msra.mxu3 %v307_v4  ;;  %vm210_vm8 = vmand %vm208_vm6, %vm209_vm7 }
  0x15   :  { %263 = vmatmul.msk.bf16.vlgmr.msra.gmra.mxu0 %vm85_vm0, %v64_v5  ;;  %vm230_vm11 = vmand %vm228_vm9, %vm229_vm10 }
  0x16   :  { %234 = vmatpush.bf16.msrb.mxu0 %v308_v1 }
  0x17   :  { %176 = vmatpush.bf16.msra.mxu1 %v306_v6  ;;  %196 = vmatpush.bf16.msra.mxu2 %v306_v6 }
  0x18   :  { %216 = vmatpush.bf16.msra.mxu3 %v306_v6 }
  0x1a   :  { %235 = vmatpush.bf16.msrb.mxu0 %v307_v4 }
  0x1b   :  { %177 = vmatpush.bf16.msra.mxu1 %v305_v7  ;;  %197 = vmatpush.bf16.msra.mxu2 %v305_v7 }
  0x1c   :  { %217 = vmatpush.bf16.msra.mxu3 %v305_v7 }
  0x1e   :  { %236 = vmatpush.bf16.msrb.mxu0 %v306_v6 }
  0x1f   :  { %178 = vmatpush.bf16.msra.mxu1 %v304_v8  ;;  %198 = vmatpush.bf16.msra.mxu2 %v304_v8 }
  0x20   :  { %218 = vmatpush.bf16.msra.mxu3 %v304_v8 }
  0x22   :  { %237 = vmatpush.bf16.msrb.mxu0 %v305_v7 }
  0x23   :  { %179 = vmatpush.bf16.msra.mxu1 %v303_v9  ;;  %199 = vmatpush.bf16.msra.mxu2 %v303_v9 }
  0x24   :  { %219 = vmatpush.bf16.msra.mxu3 %v303_v9 }
  0x26   :  { %238 = vmatpush.bf16.msrb.mxu0 %v304_v8 }
  0x27   :  { %180 = vmatpush.bf16.msra.mxu1 %v302_v10  ;;  %200 = vmatpush.bf16.msra.mxu2 %v302_v10 }
  0x28   :  { %220 = vmatpush.bf16.msra.mxu3 %v302_v10 }
  0x2a   :  { %239 = vmatpush.bf16.msrb.mxu0 %v303_v9 }
  0x2b   :  { %181 = vmatpush.bf16.msra.mxu1 %v301_v11  ;;  %201 = vmatpush.bf16.msra.mxu2 %v301_v11 }
  0x2c   :  { %221 = vmatpush.bf16.msra.mxu3 %v301_v11 }
  0x2e   :  { %240 = vmatpush.bf16.msrb.mxu0 %v302_v10 }
  0x32   :  { %241 = vmatpush.bf16.msrb.mxu0 %v301_v11 }
  0x92   :  { %v98_v15 = vpop.f32.mrf.mxu0 }
  0x93   :  { %v99_v16 = vadd.f32 %v314_v13, %v98_v15 }
  0x95   :  { %v123_v17 = vmax.f32 %v99_v16, 0.0 }
  0x97   :  { %v124_v18 = vsel %vm121_vm1, %v123_v17, 0.0  ;;  %v297_v19 = vpack.c.bf16 %v123_v17, %v123_v17 }
  0x99   :  { %298 = vmatmul.msk.bf16.vlgmr.msra.gmra.mxu1 %vm296_vm2, %v297_v19 }
  0x9a   :  { %v100_v20 = vpop.f32.mrf.mxu0 }
 0x116   :  { %v183_v21 = vpop.f32.mrf.mxu1 }
 0x117   :  { %v187_v22 = vadd.f32 %v183_v21, %v99_v16 }
 0x119   :  { %v191_v23 = vmax.f32 %v187_v22, 0.0 }
 0x11b   :  { %v192_v24 = vsel %vm190_vm5, %v191_v23, %v124_v18 }
 0x11c   :  { %v193_v25 = vpack.c.bf16 %v192_v24, %v192_v24 }
 0x11e   :  { %v185_v26 = vpop.f32.mrf.mxu1  ;;  %202 = vmatmul.bf16.vlgmr.msra.gmra.mxu2 %v193_v25 }
 0x1a1   :  { %v203_v27 = vpop.f32.mrf.mxu2 }
 0x1a2   :  { %v207_v28 = vadd.f32 %v203_v27, %v99_v16 }
 0x1a4   :  { %v211_v29 = vmax.f32 %v207_v28, 0.0 }
 0x1a6   :  { %v212_v30 = vsel %vm210_vm8, %v211_v29, %v192_v24 }
 0x1a7   :  { %v213_v31 = vpack.c.bf16 %v212_v30, %v212_v30 }
 0x1a9   :  { %v205_v32 = vpop.f32.mrf.mxu2  ;;  %222 = vmatmul.bf16.vlgmr.msra.gmra.mxu3 %v213_v31 }
 0x22c   :  { %v223_v33 = vpop.f32.mrf.mxu3 }
 0x22d   :  { %v227_v34 = vadd.f32 %v223_v33, %v99_v16 }
 0x22f   :  { %v231_v35 = vmax.f32 %v227_v34, 0.0 }
 0x231   :  { %v232_v36 = vsel %vm230_vm11, %v231_v35, %v212_v30 }
 0x232   :  { %v233_v37 = vpack.c.bf16 %v232_v36, %v232_v36 }
 0x234   :  { %v225_v38 = vpop.f32.mrf.mxu3  ;;  %242 = vmatmul.bf16.vlgmr.msrb.gmra.mxu0 %v233_v37 }
 0x2b1   :  { %v243_v39 = vpop.f32.mrf.mxu0 }
 0x2b2   :  { %v247_v40 = vadd.f32 %v243_v39, %v99_v16 }
 0x2b4   :  { %248 = vst [vmem:[%s440_s4] sm:$0xf] %v247_v40 }
 0x2b9   :  { %v245_v41 = vpop.f32.mrf.mxu0 }
 0x2ba   :  { %253 = vsyncpa [#allocation3], 1 }
 0x2bb   :  { %254 = vsyncpa [#allocation5], 1 }

</bundles_post_ra>
